<compile_context>
chip_gen: v7x
topology: tpu7x:2x2x1
jax: 0.10.0
libtpu: 0.0.40
codegen_flags: <defaults>
</compile_context>

<pallas_src>
import jax
import jax.numpy as jnp
from jax.experimental import pallas as pl
from jax.experimental.pallas import tpu as pltpu


# ---------------------------------------------------------------------------
# Pallas kernel (transposed working layout: rows = channels, lanes = pixels):
#   a   = relu(Wg @ g + Wx @ x + bgx)   (F_int, tm)  f32 accumulator
#   psi = sigmoid(sum(wp * a) + bp)     (1, tm)
#   out = x * psi                       (F_l, tm)
# ---------------------------------------------------------------------------
def attention_block_kernel(g_ref, x_ref, wg_ref, wx_ref, bgx_ref, wp_ref,
                           bp_ref, o_ref):
    x = x_ref[...]                                     # (F_l, tm) native dtype

    # W_g / W_x branches: two accumulating MXU dots (no concat, no upcast;
    # bf16 x bf16 -> f32 is the native single-pass MXU path).
    a = jnp.dot(wg_ref[...], g_ref[...], preferred_element_type=jnp.float32)
    a = a + jnp.dot(wx_ref[...], x, preferred_element_type=jnp.float32)
    a = jnp.maximum(a + bgx_ref[...], 0.0)             # relu, (F_int, tm) f32

    # psi branch off the MXU: VPU multiply + sublane (XLU) reduction instead
    # of an M=1 matmul; scalar bias comes from SMEM (scalar path).
    psi = jnp.sum(wp_ref[...] * a, axis=0, keepdims=True) + bp_ref[0, 0]
    psi = jax.nn.sigmoid(psi)                          # (1, tm) f32
    # NOTE: OOB lanes of the last pixel tile carry garbage through sigmoid;
    # harmless (all ops are pointwise along lanes, OOB lanes are dropped on
    # store), but any future cross-lane reduction must mask them.

    # Gate the skip features; psi broadcasts along the channel sublanes.
    o_ref[...] = (x * psi).astype(o_ref.dtype)


def attention_block_pallas(g3, x3, wg, wx, bgx, wp, bp, *, tm):
    """g3: (N, F_g, HW), x3: (N, F_l, HW); weights BN-folded, transposed layout."""
    N, F_g, HW = g3.shape
    _, F_l, _ = x3.shape

    # Non-divisible pixel counts are handled by Pallas block padding: OOB lanes
    # of the last tile are dropped on the output store.
    grid = (N, pl.cdiv(HW, tm))

    def pix_spec(C):
        # Squeezed batch dim; (C, tm) block — channels on sublanes, pixels on lanes.
        return pl.BlockSpec((None, C, tm), lambda b, i: (b, 0, i))

    # Constant operands: whole array resident in VMEM once (no per-step DMA,
    # no double-buffering); scalar psi bias in SMEM.
    resident = pl.BlockSpec(memory_space=pltpu.MemorySpace.VMEM)
    scalar = pl.BlockSpec(memory_space=pltpu.MemorySpace.SMEM)

    return pl.pallas_call(
        attention_block_kernel,
        out_shape=jax.ShapeDtypeStruct((N, F_l, HW), x3.dtype),
        grid=grid,
        in_specs=[
            pix_spec(F_g),      # g tile       (F_g, tm)      (bf16)
            pix_spec(F_l),      # x tile       (F_l, tm)      (bf16)
            resident,           # Wg^T         (F_int, F_g)   (bf16, BN-folded)
            resident,           # Wx^T         (F_int, F_l)   (bf16, BN-folded)
            resident,           # bg + bx      (F_int, 1)     (f32)
            resident,           # Wpsi column  (F_int, 1)     (f32)
            scalar,             # bpsi         (1, 1)         (f32, SMEM)
        ],
        out_specs=pix_spec(F_l),
        # Both grid axes are independent -> megacore sharding on v7x.
        compiler_params=pltpu.CompilerParams(
            dimension_semantics=("parallel", "parallel")),
    )(g3, x3, wg, wx, bgx, wp, bp)


# ---------------------------------------------------------------------------
# Parameter construction (deterministic) + BN folding (eval mode)
# ---------------------------------------------------------------------------
def fold_bn_t(conv_w, conv_b, gamma, beta, mean, var, eps=1e-5):
    """conv_w: (C_out, C_in) for a 1x1 conv.  Returns weight in the transposed
    working layout (C_out, C_in) acting on (C_in, pixels), bias (C_out, 1)."""
    scale = gamma / jnp.sqrt(var + eps)              # (C_out,)
    w_t = conv_w * scale[:, None]                    # (C_out, C_in)
    b = ((conv_b - mean) * scale + beta)[:, None]    # (C_out, 1)
    return w_t, b


def make_params(key, F_g, F_l, F_int):
    ks = jax.random.split(key, 9)
    # conv weights (C_out, C_in) — kernel_size=1, spatial dims dropped
    wg_conv = 0.1 * jax.random.normal(ks[0], (F_int, F_g), jnp.float32)
    bg_conv = 0.1 * jax.random.normal(ks[1], (F_int,), jnp.float32)
    wx_conv = 0.1 * jax.random.normal(ks[2], (F_int, F_l), jnp.float32)
    bx_conv = 0.1 * jax.random.normal(ks[3], (F_int,), jnp.float32)
    wp_conv = 0.1 * jax.random.normal(ks[4], (1, F_int), jnp.float32)
    bp_conv = 0.1 * jax.random.normal(ks[5], (1,), jnp.float32)

    # BatchNorm params (eval mode): deterministic non-trivial values
    def bn(c, k):
        gamma = 1.0 + 0.05 * jax.random.normal(k, (c,), jnp.float32)
        beta = 0.02 * jnp.arange(c, dtype=jnp.float32)
        mean = 0.01 * jnp.arange(c, dtype=jnp.float32)
        var = jnp.ones((c,), jnp.float32) + 0.1
        return gamma, beta, mean, var

    wg_t, bg = fold_bn_t(wg_conv, bg_conv, *bn(F_int, ks[6]))  # (F_int,F_g),(F_int,1)
    wx_t, bx = fold_bn_t(wx_conv, bx_conv, *bn(F_int, ks[7]))  # (F_int,F_l),(F_int,1)
    wp_t, bp = fold_bn_t(wp_conv, bp_conv, *bn(1, ks[8]))      # (1,F_int),(1,1)

    bgx = bg + bx          # biases of both branches are added before the relu
    wp_col = wp_t.T        # (F_int, 1) column form for the off-MXU psi branch
    return wg_t, wx_t, bgx, wp_col, bp


# ---------------------------------------------------------------------------
# Wrapper: NCHW in / NCHW out (PyTorch convention) — reshape only, no transpose.
# HBM I/O runs in `compute_dtype` (bf16 by default: the kernel is HBM-bound);
# accumulation is f32 inside the kernel either way.
# ---------------------------------------------------------------------------
def attention_block_forward(g_nchw, x_nchw, params, *, tm=1024,
                            compute_dtype=jnp.bfloat16):
    wg, wx, bgx, wp, bp = params
    N, F_g, H, W = g_nchw.shape
    _, F_l, _, _ = x_nchw.shape
    F_int = wg.shape[0]
    HW = H * W

    # bf16 I/O + bf16 matmul weights (keeps the MXU on the single-pass path);
    # biases / psi column stay f32 (they act on the f32 accumulator).
    g3 = g_nchw.reshape(N, F_g, HW).astype(compute_dtype)
    x3 = x_nchw.reshape(N, F_l, HW).astype(compute_dtype)
    wg = wg.astype(compute_dtype)
    wx = wx.astype(compute_dtype)
    itemsize = jnp.dtype(compute_dtype).itemsize

    # Pixel tile: multiple of 128, no bigger than the (128-aligned) image, and
    # small enough that double-buffered I/O tiles + the f32 `a` intermediate
    # stay inside a conservative 8 MiB budget (safe under v5e's 16 MiB default
    # scoped VMEM, v6e's 32 MiB, and v7x's 64 MiB physical) — so no explicit
    # vmem_limit_bytes is needed.
    tm = int(min(tm, max(128, pl.cdiv(HW, 128) * 128)))
    bytes_per_lane = 2 * (F_g + 2 * F_l) * itemsize + F_int * 4
    while tm > 128 and tm * bytes_per_lane > 8 * 1024 * 1024:
        tm //= 2
    tm = max(128, (tm // 128) * 128)

    # v7x megacore: keep >= 2 grid steps so both TensorCores get work.
    # (For tiny images this trades a little per-step overhead for core balance.)
    if N * pl.cdiv(HW, tm) < 2 and HW > 128:
        tm = max(128, pl.cdiv(pl.cdiv(HW, 2), 128) * 128)

    out3 = attention_block_pallas(g3, x3, wg, wx, bgx, wp, bp, tm=tm)
    return out3.reshape(N, F_l, H, W)


def reference_forward(g_nchw, x_nchw, params, *, compute_dtype=jnp.float32):
    """Plain-JAX reference of the same (BN-folded, eval-mode) forward, using the
    same input/weight quantization as the kernel but f32 math."""
    wg, wx, bgx, wp, bp = params
    N, F_g, H, W = g_nchw.shape
    _, F_l, _, _ = x_nchw.shape
    g3 = g_nchw.reshape(N, F_g, H * W).astype(compute_dtype).astype(jnp.float32)
    x3 = x_nchw.reshape(N, F_l, H * W).astype(compute_dtype).astype(jnp.float32)
    wg = wg.astype(compute_dtype).astype(jnp.float32)
    wx = wx.astype(compute_dtype).astype(jnp.float32)
    a = (jnp.einsum('oc,ncm->nom', wg, g3)
         + jnp.einsum('oc,ncm->nom', wx, x3) + bgx[None])
    a = jnp.maximum(a, 0.0)
    psi = jax.nn.sigmoid(jnp.sum(wp[None] * a, axis=1, keepdims=True) + bp[None])
    return (x3 * psi).reshape(N, F_l, H, W)


if __name__ == "__main__":
    # Small shapes consistent with the module: batch=2, spatial=16x16,
    # F_g=8 (gating), F_l=8 (skip features), F_int=4 (= F_l // 2).
    N, H, W = 2, 16, 16
    F_g, F_l, F_int = 8, 8, 4

    key = jax.random.PRNGKey(0)
    k_g, k_x, k_p = jax.random.split(key, 3)

    g = jax.random.normal(k_g, (N, F_g, H, W), jnp.float32)
    x = jax.random.normal(k_x, (N, F_l, H, W), jnp.float32)
    params = make_params(k_p, F_g, F_l, F_int)

    out = attention_block_forward(g, x, params, compute_dtype=jnp.bfloat16)
    out = jax.block_until_ready(out)

    ref = reference_forward(g, x, params, compute_dtype=jnp.bfloat16)
    assert out.shape == (N, F_l, H, W)
    assert out.dtype == jnp.bfloat16
    assert jnp.allclose(out.astype(jnp.float32), ref, atol=3e-2, rtol=3e-2), \
        "mismatch vs reference"

    print("KERNEL_OK")
</pallas_src>

<mosaic_0001>
module attributes {stable_mosaic.version = 11 : i64} {
  func.func @attention_block_kernel(%arg0: i32, %arg1: i32, %arg2: memref<1x8x256xbf16, #tpu.memory_space<vmem>>, %arg3: memref<1x8x256xbf16, #tpu.memory_space<vmem>>, %arg4: memref<4x8xbf16, #tpu.memory_space<vmem>>, %arg5: memref<4x8xbf16, #tpu.memory_space<vmem>>, %arg6: memref<4x1xf32, #tpu.memory_space<vmem>>, %arg7: memref<4x1xf32, #tpu.memory_space<vmem>>, %arg8: memref<1x1xf32, #tpu.memory_space<smem>>, %arg9: memref<1x8x256xbf16, #tpu.memory_space<vmem>>) attributes {dimension_semantics = [#tpu.dimension_semantics<parallel>, #tpu.dimension_semantics<parallel>], iteration_bounds = array<i64: 2, 1>, scalar_prefetch = 0 : i64, scratch_operands = 0 : i64, tpu.core_type = #tpu.core_type<tc>, window_params = [{transform_indices = @transform_0, window_bounds = array<i64: 1, 8, 256>}, {transform_indices = @transform_1, window_bounds = array<i64: 1, 8, 256>}, {pipeline_mode = #tpu.pipeline_mode<synchronous>, transform_indices = @transform_2, window_bounds = array<i64: 4, 8>}, {pipeline_mode = #tpu.pipeline_mode<synchronous>, transform_indices = @transform_3, window_bounds = array<i64: 4, 8>}, {pipeline_mode = #tpu.pipeline_mode<synchronous>, transform_indices = @transform_4, window_bounds = array<i64: 4, 1>}, {pipeline_mode = #tpu.pipeline_mode<synchronous>, transform_indices = @transform_5, window_bounds = array<i64: 4, 1>}, {transform_indices = @transform_6, window_bounds = array<i64: 1, 1>}, {transform_indices = @transform_7, window_bounds = array<i64: 1, 8, 256>}]} {
    %c0 = arith.constant 0 : index
    %c0_0 = arith.constant 0 : index
    %c0_1 = arith.constant 0 : index
    %0 = vector.load %arg3[%c0, %c0_0, %c0_1] : memref<1x8x256xbf16, #tpu.memory_space<vmem>>, vector<1x8x256xbf16>
    %1 = vector.shape_cast %0 : vector<1x8x256xbf16> to vector<8x256xbf16>
    %c0_2 = arith.constant 0 : index
    %c0_3 = arith.constant 0 : index
    %2 = vector.load %arg4[%c0_2, %c0_3] : memref<4x8xbf16, #tpu.memory_space<vmem>>, vector<4x8xbf16>
    %c0_4 = arith.constant 0 : index
    %c0_5 = arith.constant 0 : index
    %c0_6 = arith.constant 0 : index
    %3 = vector.load %arg2[%c0_4, %c0_5, %c0_6] : memref<1x8x256xbf16, #tpu.memory_space<vmem>>, vector<1x8x256xbf16>
    %4 = vector.shape_cast %3 : vector<1x8x256xbf16> to vector<8x256xbf16>
    %cst = arith.constant dense<0.000000e+00> : vector<4x256xf32>
    %5 = tpu.matmul %2, %4, %cst {dimension_numbers = #tpu.dot_dimension_numbers<[1], [0], [0], [1], [0, 0, 1, 1], [], []>} : vector<4x8xbf16>, vector<8x256xbf16>, vector<4x256xf32> -> vector<4x256xf32>
    %c0_7 = arith.constant 0 : index
    %c0_8 = arith.constant 0 : index
    %6 = vector.load %arg5[%c0_7, %c0_8] : memref<4x8xbf16, #tpu.memory_space<vmem>>, vector<4x8xbf16>
    %cst_9 = arith.constant dense<0.000000e+00> : vector<4x256xf32>
    %7 = tpu.matmul %6, %1, %cst_9 {dimension_numbers = #tpu.dot_dimension_numbers<[1], [0], [0], [1], [0, 0, 1, 1], [], []>} : vector<4x8xbf16>, vector<8x256xbf16>, vector<4x256xf32> -> vector<4x256xf32>
    %8 = arith.addf %5, %7 : vector<4x256xf32>
    %c0_10 = arith.constant 0 : index
    %c0_11 = arith.constant 0 : index
    %9 = vector.load %arg6[%c0_10, %c0_11] : memref<4x1xf32, #tpu.memory_space<vmem>>, vector<4x1xf32>
    %10 = vector.broadcast %9 : vector<4x1xf32> to vector<4x256xf32>
    %11 = arith.addf %8, %10 : vector<4x256xf32>
    %cst_12 = arith.constant 0.000000e+00 : f32
    %12 = vector.broadcast %cst_12 : f32 to vector<4x256xf32>
    %13 = arith.maximumf %11, %12 : vector<4x256xf32>
    %c0_13 = arith.constant 0 : index
    %c0_14 = arith.constant 0 : index
    %14 = vector.load %arg7[%c0_13, %c0_14] : memref<4x1xf32, #tpu.memory_space<vmem>>, vector<4x1xf32>
    %15 = vector.broadcast %14 : vector<4x1xf32> to vector<4x256xf32>
    %16 = arith.mulf %15, %13 : vector<4x256xf32>
    %cst_15 = arith.constant dense<0.000000e+00> : vector<256xf32>
    %17 = vector.multi_reduction <add>, %16, %cst_15 [0] : vector<4x256xf32> to vector<256xf32>
    %18 = vector.shape_cast %17 : vector<256xf32> to vector<1x256xf32>
    %c0_16 = arith.constant 0 : index
    %c0_17 = arith.constant 0 : index
    %19 = memref.load %arg8[%c0_16, %c0_17] : memref<1x1xf32, #tpu.memory_space<smem>>
    %20 = vector.broadcast %19 : f32 to vector<1x256xf32>
    %21 = arith.addf %18, %20 : vector<1x256xf32>
    %22 = arith.negf %21 : vector<1x256xf32>
    %23 = math.exp %22 : vector<1x256xf32>
    %cst_18 = arith.constant 1.000000e+00 : f32
    %24 = vector.broadcast %cst_18 : f32 to vector<1x256xf32>
    %25 = arith.addf %24, %23 : vector<1x256xf32>
    %26 = arith.divf %24, %25 : vector<1x256xf32>
    %27 = arith.extf %1 : vector<8x256xbf16> to vector<8x256xf32>
    %28 = vector.broadcast %26 : vector<1x256xf32> to vector<8x256xf32>
    %29 = arith.mulf %27, %28 : vector<8x256xf32>
    %30 = arith.truncf %29 : vector<8x256xf32> to vector<8x256xbf16>
    %c0_19 = arith.constant 0 : index
    %c0_20 = arith.constant 0 : index
    %c0_21 = arith.constant 0 : index
    %31 = vector.load %arg9[%c0_19, %c0_20, %c0_21] : memref<1x8x256xbf16, #tpu.memory_space<vmem>>, vector<1x8x256xbf16>
    %32 = vector.shape_cast %31 : vector<1x8x256xbf16> to vector<8x256xbf16>
    %33 = vector.shape_cast %30 : vector<8x256xbf16> to vector<1x8x256xbf16>
    tpu.vector_store %arg9[%c0_19, %c0_20, %c0_21], %33 {strides = array<i32>} : memref<1x8x256xbf16, #tpu.memory_space<vmem>>, vector<1x8x256xbf16>,
    return
  }
  func.func @transform_0(%arg0: i32, %arg1: i32) -> (i32, i32, i32) {
    %c0_i32 = arith.constant 0 : i32
    %c0_i32_0 = arith.constant 0 : i32
    return %arg0, %c0_i32, %arg1 : i32, i32, i32
  }
  func.func @transform_1(%arg0: i32, %arg1: i32) -> (i32, i32, i32) {
    %c0_i32 = arith.constant 0 : i32
    %c0_i32_0 = arith.constant 0 : i32
    return %arg0, %c0_i32, %arg1 : i32, i32, i32
  }
  func.func @transform_2(%arg0: i32, %arg1: i32) -> (i32, i32) {
    %c0_i32 = arith.constant 0 : i32
    %c0_i32_0 = arith.constant 0 : i32
    %c0_i32_1 = arith.constant 0 : i32
    return %c0_i32, %c0_i32_0 : i32, i32
  }
  func.func @transform_3(%arg0: i32, %arg1: i32) -> (i32, i32) {
    %c0_i32 = arith.constant 0 : i32
    %c0_i32_0 = arith.constant 0 : i32
    %c0_i32_1 = arith.constant 0 : i32
    return %c0_i32, %c0_i32_0 : i32, i32
  }
  func.func @transform_4(%arg0: i32, %arg1: i32) -> (i32, i32) {
    %c0_i32 = arith.constant 0 : i32
    %c0_i32_0 = arith.constant 0 : i32
    %c0_i32_1 = arith.constant 0 : i32
    return %c0_i32, %c0_i32_0 : i32, i32
  }
  func.func @transform_5(%arg0: i32, %arg1: i32) -> (i32, i32) {
    %c0_i32 = arith.constant 0 : i32
    %c0_i32_0 = arith.constant 0 : i32
    %c0_i32_1 = arith.constant 0 : i32
    return %c0_i32, %c0_i32_0 : i32, i32
  }
  func.func @transform_6(%arg0: i32, %arg1: i32) -> (i32, i32) {
    %c0_i32 = arith.constant 0 : i32
    %c0_i32_0 = arith.constant 0 : i32
    %c0_i32_1 = arith.constant 0 : i32
    return %c0_i32, %c0_i32_0 : i32, i32
  }
  func.func @transform_7(%arg0: i32, %arg1: i32) -> (i32, i32, i32) {
    %c0_i32 = arith.constant 0 : i32
    %c0_i32_0 = arith.constant 0 : i32
    return %arg0, %c0_i32, %arg1 : i32, i32, i32
  }
}

</mosaic_0001>

<bundles_post_ra>
// kernel: tpu_custom_call.1
= control target key start
LH: loop header
LB: loop body
LE: loop exit
PB: predicated region body
PF: predicated region fallthrough
CT: control target
= control target key end

     0   :  { %s1124_s0 = inlined_call_operand.hbm [shape: bf16[2,8,256], index: 0, kind: input, shape index: {}]   ;;  %s1125_s1 = inlined_call_operand.vmem [shape: bf16[2,8,256], index: 1, kind: input, shape index: {}]   ;;  %s1126_s2 = inlined_call_operand.vmem [shape: bf16[4,8], index: 2, kind: input, shape index: {}]   ;;  %s1127_s3 = inlined_call_operand.vmem [shape: bf16[4,8], index: 3, kind: input, shape index: {}]   ;;  %s1128_s4 = inlined_call_operand.vmem [shape: f32[4,1], index: 4, kind: input, shape index: {}]   ;;  %s1129_s5 = inlined_call_operand.vmem [shape: f32[4,1], index: 5, kind: input, shape index: {}]   ;;  %s1130_s6 = inlined_call_operand.<no memory space> [shape: f32[1,1], index: 6, kind: input, shape index: {}]   ;;  %s1131_s7 = inlined_call_operand.hbm [shape: bf16[2,8,256], index: 7, kind: output, shape index: {}]  }
   0x1   :  { %12 = sst [smem:[#allocation2]] %s1130_s6 }
   0x2   :  { %13 = vsyncpa [#allocation4], 0 }
   0x3   :  { %15 = vsyncpa [#allocation4 + $0x1], 0 }
   0x4   :  { %16 = vsyncpa [#allocation5], 0 }
   0x5   :  { %18 = vsyncpa [#allocation5 + $0x1], 0  ;;  %s917_s26 = smov 0   ;;  %s919_s27 = smov 0  }
   0x6   :  { %s921_s28 = smov 0   ;;  %s923_s29 = smov 0  }
   0x7   :  { %s925_s30 = smov 0   ;;  %s927_s8 = smov 0  }
   0x8 LB: > { %s649_s6 = sadd.s32 4294967295, %s869_s8   ;;  %s650_s9 = sadd.s32 4294967294, %s869_s8   ;;  %s869_s8 = sphi %s927_s8, %s24_s8   ;;  %s865_s30 = sphi %s925_s30, %s1147_s30   ;;  %s861_s29 = sphi %s923_s29, %s1146_s29   ;;  %s857_s28 = sphi %s921_s28, %s1145_s28   ;;  %s853_s27 = sphi %s919_s27, %s1144_s27   ;;  %s849_s26 = sphi %s917_s26, %s1143_s26  }
   0x9   : > { %s36_s10 = sadd.s32 1, %s865_s30  ;;  %s45_s11 = sadd.s32 1, %s857_s28 }
   0xa   : > { %p38_p0 = scmp.ge.s32.totalorder %s36_s10, 2  ;;  %p52_p1 = scmp.ne.s32.totalorder %s857_s28, %s853_s27 }
   0xb   : > { %p53_p2 = scmp.eq.s32.totalorder %s869_s8, 0  ;;  %p58_p3 = scmp.ne.s32.totalorder %s853_s27, %s849_s26 }
   0xc   : > { %s1149_s10 = smov (%p38_p0, %s36_s10), 0  ;;  %p59_p5 = scmp.eq.s32.totalorder %s649_s6, 0 }
   0xd   : > { %p958_p4 = por %p53_p2, %p52_p1  ;;  %s40_s13 = ssub.s32 %s865_s30, %s1149_s10 }
   0xe   : > { %p217_p6 = scmp.eq.s32.totalorder %s649_s6, 1  ;;  %p43_p7 = scmp.eq.s32.totalorder %s40_s13, 0 }
   0xf   : > { %p964_p8 = por %p59_p5, %p58_p3  ;;  %p223_p10 = scmp.eq.s32.totalorder %s650_s9, 1 }
  0x10   : > { %p968_p9 = por %p217_p6, %p52_p1  ;;  %p693_p13 = scmp.lt.s32.totalorder %s869_s8, 2 }
  0x11   : > { %s973_s16 = scalar_select %p43_p7, %s857_s28, %s45_s11  }
  0x12   : > { %s1135_s15 = scalar_select %p968_p9, 1, 0 }
  0x13   : > { %p975_p11 = por %p223_p10, %p58_p3  ;;  %s258_s18 = sand.u32 1, %s857_s28  }
  0x14   : > { %s653_s19 = sshll.u32 %s258_s18, 3  ;;  %s677_s20 = sshll.u32 %s865_s30, 7 }
  0x15   : > { %s1136_s17 = scalar_select %p975_p11, 1, 0 }
  0x16   : > { %s986_s23 = scalar_lea.hbm %s1124_s0, %s677_s20  ;;  %s262_s24 = scalar_lea.vmem [#allocation3], %s653_s19 }
  0x17   : > { %s272_s25 = sshll.u32 %s262_s24, 4  ;;  %p992_p0 = pnand %p693_p13, %p958_p4  ;;  %s988_s25 = int_to_ptr.vmem [resolvable:$true] %s272_s25 }
  0x18   : > { %s259_s9 = scalar_lea.sflag [#allocation4], %s258_s18  ;;  %s757_s11 = scalar_lea.hbm %s986_s23, 128 }
  0x19   : > { %p758_p3 = scmp.ne.s32.totalorder %s986_s23, %s757_s11  ;;  %p759_p5 = pneg %p992_p0 }
  0x1a   : > { %s762_s12 = scalar_lea.hbm %s1124_s0, 256  ;;  %p763_p4 = scmp.lt.u32.totalorder %s986_s23, %s1124_s0 }
  0x1b   : > { %p760_p6 = pnand %p759_p5, %p758_p3  ;;  %p764_p10 = scmp.lt.u32.totalorder %s762_s12, %s757_s11 }
  0x1c   : > { %p766_p12 = scmp.lt.u32.totalorder %s757_s11, %s986_s23 }
  0x1d   : > { %p761_p7 = pneg %p760_p6  ;;  %p765_p13 = por %p764_p10, %p763_p4 }
  0x1f   : > { %p767_p1 = por %p766_p12, %p765_p13 }
  0x21   : > { %p768_p2 = pnand %p767_p1, %p761_p7 }
  0x23   : > { %771 = shalt.err (!%p768_p2)
}
  0x24   : > { %s772_s18 = scalar_lea.vmem %s988_s25, 128  ;;  %s871_s22 = smov [#allocation3]  }
  0x25   : > { %p773_p3 = scmp.ne.s32.totalorder %s988_s25, %s772_s18  ;;  %s777_s24 = sshll.u32 %s871_s22, 4  ;;  %s778_s24 = int_to_ptr.vmem [resolvable:$false] %s777_s24 }
  0x26   : > { %s779_s13 = scalar_lea.vmem %s778_s24, 256  ;;  %p780_p9 = scmp.lt.s32.totalorder %s988_s25, %s778_s24 }
  0x27   : > { %p775_p6 = pnand %p773_p3, %p759_p5  ;;  %p781_p4 = scmp.lt.s32.totalorder %s779_s13, %s772_s18 }
  0x29   : > { %p776_p11 = pneg %p775_p6  ;;  %p782_p10 = por %p781_p4, %p780_p9 }
  0x2b   : > { %p783_p12 = pnand %p782_p10, %p776_p11 }
  0x2d   : > { %786 = shalt.err (!%p783_p12)
}
  0x2e   : > { %688 = dma.hbm_to_vmem [thread:$0]  (!%p992_p0), %s986_s23, 128, %s988_s25, %s259_s9  }
  0x2f   : > { %p1138_p1 = scmp.lt.s32.totalorder %s869_s8, 3  ;;  %p1139_p2 = scmp.ge.s32.totalorder %s869_s8, 1 }
  0x31   : > { %p291_p5 = pnand %p1139_p2, %p1138_p1 }
  0x32   : > { %s1028_s11 = sand.u32 (!%p291_p5), 1, %s853_s27  }
  0x33   : > { %294 = sbr.rel (%p291_p5) target bundleno = 352 (0x160), region = 48  ;;  %s657_s19 = sshll.u32 (!%p291_p5), %s1028_s11, 3 }
  0x34   : > { %s297_s12 = scalar_lea.sflag (!%p291_p5), [#allocation4], %s1028_s11  ;;  %s300_s6 = scalar_lea.vmem (!%p291_p5), [#allocation3], %s657_s19 }
  0x3a   : > { %840 = dma.done.wait (%p964_p8), %s297_s12, 128  }
  0x3b   : > { %842 = vsyncadd (%p964_p8), %s297_s12, 4294967168  ;;  %p342_p9 = scmp.lt.s32.totalorder %s861_s29, 1  ;;  %v872_v0 = vmov 0   ;;  %vm366_vm0 = vcmask 1043456   ;;  %v355_v2 = vld [vmem:[%s300_s6] sm:$0xff]  ;;  %vm362_vm1 = vcmask 64512  }
  0x3c   : > { %405 = vmatprep.mubr.bf16.mxu0 %v872_v0  ;;  %460 = vmatprep.mubr.bf16.mxu1 %v872_v0  ;;  %v666_v4 = vcombine.high %v355_v2, %v355_v2  ;;  %v469_v5 = vld [vmem:[%s1128_s4] sm:$0xf]  ;;  %v665_v7 = vcombine.low %v355_v2, %v355_v2  ;;  %s680_s9 = sshll.u32 %s861_s29, 7  ;;  %s339_s20 = scalar_lea.vmem [#allocation6], %s657_s19 }
  0x3d   : > { %s343_s23 = scalar_select %p342_p9, %s861_s29, 1  ;;  %744 = vset.pattern.permute.xlu0 %v872_v0  ;;  %v479_v8 = vld [vmem:[%s1129_s5] sm:$0xf] }
  0x3e   : > { %472 = vperm.xlu0 %744, %v469_v5   ;;  %667 = vmatprep.subr.msk.bf16.mxu1 %vm366_vm0, %v666_v4  ;;  %v423_v10 = vsel %vm366_vm0, %v665_v7, 0  ;;  %v356_v11 = vld [vmem:[%s1127_s3] sm:$0x3]  ;;  %s1075_s22 = scalar_lea.hbm %s1131_s7, %s680_s9  ;;  %s531_s24 = scalar_lea.sflag [#allocation5], %s1028_s11 }
  0x3f   : > { %s678_s25 = sshll.u32 %s343_s23, 3  ;;  %429 = vmatpush1.bf16.msra.mxu1 %v423_v10  ;;  %v354_v12 = vld [vmem:[%s1126_s2] sm:$0x3]  ;;  %p1140_p11 = scmp.ne.s32.totalorder %s1135_s15, 0 }
  0x40   : > { %s349_s21 = scalar_lea.vmem %s1125_s1, %s678_s25  ;;  %s501_s25 = sld [smem:[#allocation2]] }
  0x41   : > { %v1043_v1 = vld [vmem:[%s349_s21] sm:$0xff]  ;;  %s547_s21 = sshll.u32 %s339_s20, 4  ;;  %s873_s29 = smov [#allocation6]   ;;  %s1077_s21 = int_to_ptr.vmem [resolvable:$true] %s547_s21 }
  0x42   : > { %v662_v3 = vcombine.high %v1043_v1, %v1043_v1  ;;  %v661_v6 = vcombine.low %v1043_v1, %v1043_v1  ;;  %482 = vperm.xlu0 %744, %v479_v8   ;;  %668 = vmatmul.mubr.msk.bf16.vlgmr.msra.gmra.mrb[0].mxu1 %vm362_vm1, %v354_v12  ;;  %v517_v54 = vunpack.c.l.bf16 %v1043_v1  ;;  %v518_v55 = vunpack.c.h.bf16 %v1043_v1  ;;  %s787_s13 = scalar_lea.vmem %s1077_s21, 128  ;;  %s791_s19 = sshll.u32 %s873_s29, 4  ;;  %s792_s19 = int_to_ptr.vmem [resolvable:$false] %s791_s19 }
  0x43   : > { %p788_p8 = scmp.ne.s32.totalorder %s1077_s21, %s787_s13  ;;  %s793_s12 = scalar_lea.vmem %s792_s19, 256 }
  0x44   : > { %663 = vmatprep.subr.msk.bf16.mxu0 %vm366_vm0, %v662_v3  ;;  %v368_v9 = vsel %vm366_vm0, %v661_v6, 0  ;;  %p794_p13 = scmp.lt.s32.totalorder %s1077_s21, %s792_s19  ;;  %p795_p3 = scmp.lt.s32.totalorder %s793_s12, %s787_s13 }
  0x45   : > { %374 = vmatpush1.bf16.msra.mxu0 %v368_v9  ;;  %p789_p0 = pnand %p788_p8, %p1140_p11 }
  0x46   : > { %v502_v42 = vstv %s501_s25  ;;  %p796_p6 = por %p795_p3, %p794_p13 }
  0x47   : > { %p790_p7 = pneg %p789_p0 }
  0x48   : > { %664 = vmatmul.mubr.msk.bf16.vlgmr.msra.gmra.mrb[0].mxu0 %vm362_vm1, %v356_v11 }
  0x49   : > { %p797_p4 = pnand %p796_p6, %p790_p7 }
  0xbd   : > { %v473_v13 = vpop.permute.xlu0 %472 }
  0xc1   : > { %v483_v27 = vpop.permute.xlu0 %482 }
 0x115   : > { %v462_v15 = vpop.f32.mrb[0].mxu1 }
 0x116   : > { %v464_v18 = vpop.f32.mrb[1].mxu1 }
 0x117   : > { %v466_v21 = vpop.f32.mrb[2].mxu1 }
 0x118   : > { %v467_v24 = vpop.f32.mrb[3].mxu1 }
 0x11b   : > { %v407_v14 = vpop.f32.mrb[0].mxu0 }
 0x11c   : > { %v463_v16 = vadd.f32 %v462_v15, %v407_v14  ;;  %v409_v17 = vpop.f32.mrb[1].mxu0 }
 0x11d   : > { %v465_v19 = vadd.f32 %v464_v18, %v409_v17  ;;  %v411_v20 = vpop.f32.mrb[2].mxu0 }
 0x11e   : > { %v475_v22 = vadd.f32 %v473_v13, %v463_v16  ;;  %v412_v23 = vpop.f32.mrb[3].mxu0 }
 0x11f   : > { %v476_v25 = vadd.f32 %v473_v13, %v465_v19 }
 0x120   : > { %v477_v26 = vmax.f32 %v475_v22, 0.0 }
 0x121   : > { %v478_v28 = vmax.f32 %v476_v25, 0.0 }
 0x122   : > { %v485_v29 = vmul.f32 %v483_v27, %v477_v26 }
 0x123   : > { %v486_v30 = vmul.f32 %v483_v27, %v478_v28 }
 0x124   : > { %v487_v31 = vsel %vm366_vm0, %v485_v29, 0.0 }
 0x125   : > { %v488_v32 = vrot.slane %v487_v31, 4  ;;  %v494_v33 = vsel %vm366_vm0, %v486_v30, 0.0 }
 0x126   : > { %v495_v34 = vrot.slane %v494_v33, 4 }
 0x127   : > { %v489_v35 = vadd.f32 %v488_v32, %v487_v31 }
 0x128   : > { %v496_v36 = vadd.f32 %v495_v34, %v494_v33 }
 0x129   : > { %v490_v37 = vrot.slane %v489_v35, 2 }
 0x12a   : > { %v497_v38 = vrot.slane %v496_v36, 2 }
 0x12b   : > { %v491_v39 = vadd.f32 %v490_v37, %v489_v35 }
 0x12c   : > { %v498_v40 = vadd.f32 %v497_v38, %v496_v36 }
 0x12d   : > { %v492_v41 = vrot.slane %v491_v39, 1 }
 0x12e   : > { %v499_v43 = vrot.slane %v498_v40, 1 }
 0x12f   : > { %v493_v44 = vadd.f32 %v492_v41, %v491_v39 }
 0x130   : > { %v500_v45 = vadd.f32 %v499_v43, %v498_v40 }
 0x131   : > { %v503_v46 = vadd.f32 %v502_v42, %v493_v44 }
 0x132   : > { %v504_v47 = vadd.f32 %v502_v42, %v500_v45 }
 0x133   : > { %v669_v48 = vmul.f32 -1.442695, %v503_v46 }
 0x134   : > { %v670_v49 = vmul.f32 -1.442695, %v504_v47 }
 0x135   : > { %749 = vpow2.f32 %v669_v48 }
 0x136   : > { %751 = vpow2.f32 %v670_v49 }
 0x13f   : > { %v750_v50 = vpop.eup %749 }
 0x140   : > { %v752_v51 = vpop.eup %751  ;;  %v511_v52 = vadd.f32 1.0, %v750_v50 }
 0x141   : > { %v512_v53 = vadd.f32 1.0, %v752_v51 }
 0x142   : > { %753 = vrcp.f32 %v511_v52 }
 0x143   : > { %755 = vrcp.f32 %v512_v53 }
 0x14c   : > { %v754_v56 = vpop.eup %753 }
 0x14d   : > { %v756_v57 = vpop.eup %755  ;;  %v519_v58 = vmul.f32 %v754_v56, %v517_v54 }
 0x14e   : > { %v520_v59 = vmul.f32 %v756_v57, %v518_v55 }
 0x150   : > { %v679_v60 = vpack.c.bf16 %v520_v59, %v519_v58 }
 0x152   : > { %529 = vst [vmem:[%s339_s20] sm:$0xff] %v679_v60 }
 0x153   : > { %800 = shalt.err (!%p797_p4)
}
 0x154   : > { %s801_s11 = scalar_lea.hbm %s1075_s22, 128  ;;  %s805_s25 = scalar_lea.hbm %s1131_s7, 256 }
 0x155   : > { %p802_p10 = scmp.ne.s32.totalorder %s1075_s22, %s801_s11  ;;  %p806_p2 = scmp.lt.u32.totalorder %s1075_s22, %s1131_s7 }
 0x156   : > { %p807_p5 = scmp.lt.u32.totalorder %s805_s25, %s801_s11  ;;  %p809_p8 = scmp.lt.u32.totalorder %s801_s11, %s1075_s22 }
 0x157   : > { %p803_p12 = pnand %p802_p10, %p1140_p11 }
 0x158   : > { %p808_p9 = por %p807_p5, %p806_p2 }
 0x159   : > { %p804_p1 = pneg %p803_p12 }
 0x15a   : > { %p810_p0 = por %p809_p8, %p808_p9 }
 0x15c   : > { %p811_p7 = pnand %p810_p0, %p804_p1 }
 0x15e   : > { %814 = shalt.err (!%p811_p7)
}
 0x15f   : > { %683 = dma.vmem_to_hbm [thread:$0]  (%p1140_p11), %s1077_s21, 128, %s1075_s22, %s531_s24  }
 0x160 PF: > { %s559_s14 = sand.u32 1, %s849_s26   ;;  %p1141_p13 = scmp.ne.s32.totalorder %s1136_s17, 0 }
 0x161   : > { %p1142_p3 = scmp.ge.s32.totalorder %s869_s8, 2  ;;  %s560_s18 = scalar_lea.sflag [#allocation5], %s559_s14 }
 0x163   : > { %p690_p6 = pnand %p1142_p3, %p1141_p13 }
 0x165   : > { %844 = dma.done.wait (!%p690_p6), %s560_s18, 128  }
 0x166   : > { %846 = vsyncadd (!%p690_p6), %s560_s18, 4294967168  ;;  %s24_s8 = sadd.s32 1, %s869_s8   ;;  %s1143_s26 = smov %s853_s27 }
 0x167   : > { %p21_p4 = scmp.ge.s32.totalorder %s24_s8, 4   ;;  %s1144_s27 = smov %s857_s28 }
 0x168   : > { %s1145_s28 = smov %s973_s16  ;;  %s1146_s29 = smov %s865_s30 }
 0x169   : > { %s1147_s30 = smov %s1149_s10  ;;  %23 = sbr.rel (!%p21_p4) target bundleno = 8 (0x8), region = 96 }
 0x170   :  { %565 = vsyncpa [#allocation4], 1 }
 0x171   :  { %567 = vsyncpa [#allocation4 + $0x1], 1 }
 0x172   :  { %568 = vsyncpa [#allocation5], 1 }
 0x173   :  { %570 = vsyncpa [#allocation5 + $0x1], 1 }

</bundles_post_ra>
